<compile_context>
chip_gen: v5e
topology: v5e:2x2
jax: 0.10.0
libtpu: 0.0.40
codegen_flags: <defaults>
</compile_context>

<pallas_src>
import functools

import jax
import jax.numpy as jnp
from jax import lax
from jax.experimental import pallas as pl
from jax.experimental.pallas import tpu as pltpu

BN_EPS = 1e-5
_HALO = 128  # left halo = one full vreg of lanes so the interior store is lane-aligned


def _sigmoid(x):
    # sigmoid(x) = 0.5 * tanh(0.5 * x) + 0.5 : single EUP transcendental + VPU fma.
    return 0.5 * jnp.tanh(0.5 * x) + 0.5


def _down_kernel(x_ref, w1_ref, a1_ref, w2_ref, a2_ref, o_ref,
                 pad1_ref, pad2_ref, *, K, P, Lh, B):
    """Fused MaxPool1d(2) + (Conv1d -> BN -> Sigmoid) x 2 for B batch elements.

    x_ref:    (B, 2, Cin, Lh)   bf16, [even, odd] input samples stacked on axis 1
    w1_ref:   (Cout, K*Cin)     bf16 conv1 weights, im2col layout
    a1_ref:   (2, Cout, 1)      f32 [scale; shift] folded conv bias + eval BN
    w2_ref:   (Cout, K*Cout)    bf16 conv2 weights
    a2_ref:   (2, Cout, 1)
    o_ref:    (B, Cout, Lh)
    pad1_ref: (Cin,  _HALO+Lh+P) bf16 VMEM scratch (zero halos + activation)
    pad2_ref: (Cout, _HALO+Lh+P) bf16 VMEM scratch
    """
    Cin = pad1_ref.shape[0]
    Cout = pad2_ref.shape[0]

    # Zero ONLY the 2*P halo lanes that are read as 'same' padding (tiny masked
    # stores). The interior is fully overwritten below for every sample, so no
    # full-buffer zeroing is needed; doing it every step keeps the kernel
    # correct regardless of how the "parallel" grid is sharded across cores.
    pad1_ref[:, _HALO - P:_HALO] = jnp.zeros((Cin, P), pad1_ref.dtype)
    pad1_ref[:, _HALO + Lh:_HALO + Lh + P] = jnp.zeros((Cin, P), pad1_ref.dtype)
    pad2_ref[:, _HALO - P:_HALO] = jnp.zeros((Cout, P), pad2_ref.dtype)
    pad2_ref[:, _HALO + Lh:_HALO + Lh + P] = jnp.zeros((Cout, P), pad2_ref.dtype)

    # Hoist weight / affine reads out of the unrolled batch loop.
    w1 = w1_ref[...]
    w2 = w2_ref[...]
    s1, t1 = a1_ref[0], a1_ref[1]
    s2, t2 = a2_ref[0], a2_ref[1]

    for b in range(B):  # unrolled: B is a small static batch block
        # ---- MaxPool1d(2): pairwise max fused in-register ---------------------
        pooled = jnp.maximum(x_ref[b, 0], x_ref[b, 1])               # (Cin, Lh) bf16

        # ---- conv1 + BN + sigmoid: one im2col MXU matmul ----------------------
        pad1_ref[:, _HALO:_HALO + Lh] = pooled                       # aligned store
        slab1 = jnp.concatenate(                                     # (K*Cin, Lh)
            [pad1_ref[:, _HALO + k - P:_HALO + k - P + Lh] for k in range(K)],
            axis=0)
        h = jnp.dot(w1, slab1, preferred_element_type=jnp.float32)   # (Cout, Lh) f32
        h = _sigmoid(h * s1 + t1)

        # ---- conv2 + BN + sigmoid ---------------------------------------------
        pad2_ref[:, _HALO:_HALO + Lh] = h.astype(pad2_ref.dtype)
        slab2 = jnp.concatenate(                                     # (K*Cout, Lh)
            [pad2_ref[:, _HALO + k - P:_HALO + k - P + Lh] for k in range(K)],
            axis=0)
        y = jnp.dot(w2, slab2, preferred_element_type=jnp.float32)   # (Cout, Lh) f32
        y = _sigmoid(y * s2 + t2)
        o_ref[b] = y.astype(o_ref.dtype)


def _pick_block_n(n, cap=8):
    """Largest divisor of n that is <= cap (static unrolled batch block)."""
    for b in range(min(cap, n), 0, -1):
        if n % b == 0:
            return b
    return 1


def down_forward(x, w1, a1, w2, a2, *, K, block_n=None, out_dtype=jnp.float32):
    """Down.forward (eval mode).

    x:  (N, Cin, L) f32
    w1: (Cout, K*Cin) bf16 im2col weights,  a1: (2, Cout, 1) f32 folded affine
    w2: (Cout, K*Cout) bf16,                a2: (2, Cout, 1) f32
    """
    N, Cin, L = x.shape
    Cout = w1.shape[0]
    P = (K - 1) // 2
    Lh = L // 2
    x = x[:, :, :2 * Lh]          # MaxPool1d(2) drops a trailing odd sample
    Lpad = _HALO + Lh + P

    if block_n is None:
        block_n = _pick_block_n(N)
    assert N % block_n == 0, "block_n must divide the batch size"
    B = block_n

    # Single fused XLA pass: de-interleave even/odd once and downcast to bf16
    # (half the HBM bytes). The pool's max itself is computed inside the kernel.
    x2 = jnp.stack([x[:, :, 0::2], x[:, :, 1::2]], axis=1).astype(jnp.bfloat16)

    kernel = functools.partial(_down_kernel, K=K, P=P, Lh=Lh, B=B)
    return pl.pallas_call(
        kernel,
        out_shape=jax.ShapeDtypeStruct((N, Cout, Lh), out_dtype),
        grid_spec=pltpu.PrefetchScalarGridSpec(
            num_scalar_prefetch=0,
            grid=(N // B,),
            in_specs=[
                pl.BlockSpec((B, 2, Cin, Lh), lambda n: (n, 0, 0, 0)),
                # Constant index maps: weights / affines are DMA'd once and stay
                # VMEM-resident across the (parallel) batch grid.
                pl.BlockSpec((Cout, K * Cin), lambda n: (0, 0)),
                pl.BlockSpec((2, Cout, 1), lambda n: (0, 0, 0)),
                pl.BlockSpec((Cout, K * Cout), lambda n: (0, 0)),
                pl.BlockSpec((2, Cout, 1), lambda n: (0, 0, 0)),
            ],
            out_specs=pl.BlockSpec((B, Cout, Lh), lambda n: (n, 0, 0)),
            scratch_shapes=[
                pltpu.VMEM((Cin, Lpad), jnp.bfloat16),
                pltpu.VMEM((Cout, Lpad), jnp.bfloat16),
            ],
        ),
        compiler_params=pltpu.CompilerParams(
            dimension_semantics=("parallel",)),
    )(x2, w1, a1, w2, a2)


# -----------------------------------------------------------------------------
# Deterministic synthetic parameters (Conv1d + eval-mode BatchNorm1d)
# -----------------------------------------------------------------------------
def make_conv_bn_params(key, cin, cout, ksz):
    kw, kb, kg, kbe, km, kv = jax.random.split(key, 6)
    w = 0.05 * jax.random.normal(kw, (cout, cin, ksz), jnp.float32)    # Conv1d.weight
    b = 0.05 * jax.random.normal(kb, (cout,), jnp.float32)             # Conv1d.bias
    gamma = 1.0 + 0.1 * jax.random.normal(kg, (cout,), jnp.float32)    # BN.weight
    beta = 0.1 * jax.random.normal(kbe, (cout,), jnp.float32)          # BN.bias
    running_mean = 0.1 * jax.random.normal(km, (cout,), jnp.float32)   # BN.running_mean
    running_var = 1.0 + 0.5 * jax.random.uniform(kv, (cout,), jnp.float32)  # BN.running_var
    return w, b, gamma, beta, running_mean, running_var


def fold_conv_bn(w, b, gamma, beta, running_mean, running_var, eps=BN_EPS):
    """Fold eval-mode BatchNorm1d (general running stats) + conv bias."""
    cout, cin, ksz = w.shape
    scale = gamma / jnp.sqrt(running_var + eps)
    shift = (b - running_mean) * scale + beta
    # im2col layout: slab row index = k*Cin + ci  ->  W[co, k*Cin + ci] = w[co, ci, k]
    w_mat = jnp.transpose(w, (0, 2, 1)).reshape(cout, ksz * cin).astype(jnp.bfloat16)
    affine = jnp.stack([scale, shift])[:, :, None]                     # (2, Cout, 1) f32
    return w_mat, affine


def down_reference(x, params1, params2, K, eps=BN_EPS):
    """Pure-JAX f32 reference of Down.forward (eval mode)."""
    P = (K - 1) // 2
    Lh = x.shape[-1] // 2
    x = x[..., :2 * Lh]
    z = jnp.maximum(x[..., 0::2], x[..., 1::2])           # MaxPool1d(2)
    for (w, b, gamma, beta, mean, var) in (params1, params2):
        z = lax.conv_general_dilated(
            z, w, window_strides=(1,), padding=[(P, P)],
            dimension_numbers=('NCH', 'OIH', 'NCH'),
            precision=lax.Precision.HIGHEST)
        z = (z + (b - mean)[None, :, None]) / jnp.sqrt(var + eps)[None, :, None]
        z = z * gamma[None, :, None] + beta[None, :, None]
        z = jax.nn.sigmoid(z)
    return z


if __name__ == "__main__":
    # Small Down(in=8, out=16, kernel_size=7); L=256 so pooled length = 128 lanes.
    N, C_IN, C_OUT, K, L = 4, 8, 16, 7, 256

    key = jax.random.PRNGKey(0)
    k1, k2, kx = jax.random.split(key, 3)
    raw1 = make_conv_bn_params(k1, C_IN, C_OUT, K)
    raw2 = make_conv_bn_params(k2, C_OUT, C_OUT, K)
    w1, a1 = fold_conv_bn(*raw1)
    w2, a2 = fold_conv_bn(*raw2)
    x = jax.random.normal(kx, (N, C_IN, L), jnp.float32)

    # block_n=2 -> 2 samples per grid step, grid of 2 steps (exercises the
    # multi-step path; default picks the largest divisor of N up to 8).
    fwd = jax.jit(functools.partial(down_forward, K=K, block_n=2))
    out = fwd(x, w1, a1, w2, a2)
    jax.block_until_ready(out)

    assert out.shape == (N, C_OUT, L // 2)
    assert out.dtype == jnp.float32
    ref = down_reference(x, raw1, raw2, K)
    max_err = float(jnp.max(jnp.abs(out - ref)))
    assert max_err < 2e-2, f"max abs error vs f32 reference: {max_err}"
    print("KERNEL_OK")
</pallas_src>

<mosaic_0001>
module attributes {stable_mosaic.version = 11 : i64} {
  func.func @_down_kernel(%arg0: i32, %arg1: memref<2x2x8x128xbf16, #tpu.memory_space<vmem>>, %arg2: memref<16x56xbf16, #tpu.memory_space<vmem>>, %arg3: memref<2x16x1xf32, #tpu.memory_space<vmem>>, %arg4: memref<16x112xbf16, #tpu.memory_space<vmem>>, %arg5: memref<2x16x1xf32, #tpu.memory_space<vmem>>, %arg6: memref<2x16x128xf32, #tpu.memory_space<vmem>>, %arg7: memref<8x259xbf16, #tpu.memory_space<vmem>>, %arg8: memref<16x259xbf16, #tpu.memory_space<vmem>>) attributes {dimension_semantics = [#tpu.dimension_semantics<parallel>], iteration_bounds = array<i64: 2>, scalar_prefetch = 0 : i64, scratch_operands = 2 : i64, tpu.core_type = #tpu.core_type<tc>, window_params = [{transform_indices = @transform_0, window_bounds = array<i64: 2, 2, 8, 128>}, {pipeline_mode = #tpu.pipeline_mode<synchronous>, transform_indices = @transform_1, window_bounds = array<i64: 16, 56>}, {pipeline_mode = #tpu.pipeline_mode<synchronous>, transform_indices = @transform_2, window_bounds = array<i64: 2, 16, 1>}, {pipeline_mode = #tpu.pipeline_mode<synchronous>, transform_indices = @transform_3, window_bounds = array<i64: 16, 112>}, {pipeline_mode = #tpu.pipeline_mode<synchronous>, transform_indices = @transform_4, window_bounds = array<i64: 2, 16, 1>}, {transform_indices = @transform_5, window_bounds = array<i64: 2, 16, 128>}]} {
    %cst = arith.constant 0.000000e+00 : bf16
    %0 = vector.broadcast %cst : bf16 to vector<8x3xbf16>
    %c0 = arith.constant 0 : index
    %c125 = arith.constant 125 : index
    %1 = vector.load %arg7[%c0, %c125] : memref<8x259xbf16, #tpu.memory_space<vmem>>, vector<8x3xbf16>
    tpu.vector_store %arg7[%c0, %c125], %0 {strides = array<i32>} : memref<8x259xbf16, #tpu.memory_space<vmem>>, vector<8x3xbf16>,
    %cst_0 = arith.constant 0.000000e+00 : bf16
    %2 = vector.broadcast %cst_0 : bf16 to vector<8x3xbf16>
    %c0_1 = arith.constant 0 : index
    %c256 = arith.constant 256 : index
    %3 = vector.load %arg7[%c0_1, %c256] : memref<8x259xbf16, #tpu.memory_space<vmem>>, vector<8x3xbf16>
    tpu.vector_store %arg7[%c0_1, %c256], %2 {strides = array<i32>} : memref<8x259xbf16, #tpu.memory_space<vmem>>, vector<8x3xbf16>,
    %cst_2 = arith.constant 0.000000e+00 : bf16
    %4 = vector.broadcast %cst_2 : bf16 to vector<16x3xbf16>
    %c0_3 = arith.constant 0 : index
    %c125_4 = arith.constant 125 : index
    %5 = vector.load %arg8[%c0_3, %c125_4] : memref<16x259xbf16, #tpu.memory_space<vmem>>, vector<16x3xbf16>
    tpu.vector_store %arg8[%c0_3, %c125_4], %4 {strides = array<i32>} : memref<16x259xbf16, #tpu.memory_space<vmem>>, vector<16x3xbf16>,
    %cst_5 = arith.constant 0.000000e+00 : bf16
    %6 = vector.broadcast %cst_5 : bf16 to vector<16x3xbf16>
    %c0_6 = arith.constant 0 : index
    %c256_7 = arith.constant 256 : index
    %7 = vector.load %arg8[%c0_6, %c256_7] : memref<16x259xbf16, #tpu.memory_space<vmem>>, vector<16x3xbf16>
    tpu.vector_store %arg8[%c0_6, %c256_7], %6 {strides = array<i32>} : memref<16x259xbf16, #tpu.memory_space<vmem>>, vector<16x3xbf16>,
    %c0_8 = arith.constant 0 : index
    %c0_9 = arith.constant 0 : index
    %8 = vector.load %arg2[%c0_8, %c0_9] : memref<16x56xbf16, #tpu.memory_space<vmem>>, vector<16x56xbf16>
    %c0_10 = arith.constant 0 : index
    %c0_11 = arith.constant 0 : index
    %9 = vector.load %arg4[%c0_10, %c0_11] : memref<16x112xbf16, #tpu.memory_space<vmem>>, vector<16x112xbf16>
    %c0_12 = arith.constant 0 : index
    %c0_13 = arith.constant 0 : index
    %c0_14 = arith.constant 0 : index
    %10 = vector.load %arg3[%c0_12, %c0_13, %c0_14] : memref<2x16x1xf32, #tpu.memory_space<vmem>>, vector<1x16x1xf32>
    %11 = vector.shape_cast %10 : vector<1x16x1xf32> to vector<16x1xf32>
    %c1 = arith.constant 1 : index
    %c0_15 = arith.constant 0 : index
    %c0_16 = arith.constant 0 : index
    %12 = vector.load %arg3[%c1, %c0_15, %c0_16] : memref<2x16x1xf32, #tpu.memory_space<vmem>>, vector<1x16x1xf32>
    %13 = vector.shape_cast %12 : vector<1x16x1xf32> to vector<16x1xf32>
    %c0_17 = arith.constant 0 : index
    %c0_18 = arith.constant 0 : index
    %c0_19 = arith.constant 0 : index
    %14 = vector.load %arg5[%c0_17, %c0_18, %c0_19] : memref<2x16x1xf32, #tpu.memory_space<vmem>>, vector<1x16x1xf32>
    %15 = vector.shape_cast %14 : vector<1x16x1xf32> to vector<16x1xf32>
    %c1_20 = arith.constant 1 : index
    %c0_21 = arith.constant 0 : index
    %c0_22 = arith.constant 0 : index
    %16 = vector.load %arg5[%c1_20, %c0_21, %c0_22] : memref<2x16x1xf32, #tpu.memory_space<vmem>>, vector<1x16x1xf32>
    %17 = vector.shape_cast %16 : vector<1x16x1xf32> to vector<16x1xf32>
    %c0_23 = arith.constant 0 : index
    %c0_24 = arith.constant 0 : index
    %c0_25 = arith.constant 0 : index
    %c0_26 = arith.constant 0 : index
    %18 = vector.load %arg1[%c0_23, %c0_24, %c0_25, %c0_26] : memref<2x2x8x128xbf16, #tpu.memory_space<vmem>>, vector<1x1x8x128xbf16>
    %19 = vector.shape_cast %18 : vector<1x1x8x128xbf16> to vector<8x128xbf16>
    %c0_27 = arith.constant 0 : index
    %c1_28 = arith.constant 1 : index
    %c0_29 = arith.constant 0 : index
    %c0_30 = arith.constant 0 : index
    %20 = vector.load %arg1[%c0_27, %c1_28, %c0_29, %c0_30] : memref<2x2x8x128xbf16, #tpu.memory_space<vmem>>, vector<1x1x8x128xbf16>
    %21 = vector.shape_cast %20 : vector<1x1x8x128xbf16> to vector<8x128xbf16>
    %22 = arith.maximumf %19, %21 : vector<8x128xbf16>
    %c0_31 = arith.constant 0 : index
    %c128 = arith.constant 128 : index
    %23 = vector.load %arg7[%c0_31, %c128] : memref<8x259xbf16, #tpu.memory_space<vmem>>, vector<8x128xbf16>
    tpu.vector_store %arg7[%c0_31, %c128], %22 {strides = array<i32>} : memref<8x259xbf16, #tpu.memory_space<vmem>>, vector<8x128xbf16>,
    %c0_32 = arith.constant 0 : index
    %c125_33 = arith.constant 125 : index
    %24 = vector.load %arg7[%c0_32, %c125_33] : memref<8x259xbf16, #tpu.memory_space<vmem>>, vector<8x128xbf16>
    %c0_34 = arith.constant 0 : index
    %c126 = arith.constant 126 : index
    %25 = vector.load %arg7[%c0_34, %c126] : memref<8x259xbf16, #tpu.memory_space<vmem>>, vector<8x128xbf16>
    %c0_35 = arith.constant 0 : index
    %c127 = arith.constant 127 : index
    %26 = vector.load %arg7[%c0_35, %c127] : memref<8x259xbf16, #tpu.memory_space<vmem>>, vector<8x128xbf16>
    %c0_36 = arith.constant 0 : index
    %c128_37 = arith.constant 128 : index
    %27 = vector.load %arg7[%c0_36, %c128_37] : memref<8x259xbf16, #tpu.memory_space<vmem>>, vector<8x128xbf16>
    %c0_38 = arith.constant 0 : index
    %c129 = arith.constant 129 : index
    %28 = vector.load %arg7[%c0_38, %c129] : memref<8x259xbf16, #tpu.memory_space<vmem>>, vector<8x128xbf16>
    %c0_39 = arith.constant 0 : index
    %c130 = arith.constant 130 : index
    %29 = vector.load %arg7[%c0_39, %c130] : memref<8x259xbf16, #tpu.memory_space<vmem>>, vector<8x128xbf16>
    %c0_40 = arith.constant 0 : index
    %c131 = arith.constant 131 : index
    %30 = vector.load %arg7[%c0_40, %c131] : memref<8x259xbf16, #tpu.memory_space<vmem>>, vector<8x128xbf16>
    %31 = tpu.concatenate %24, %25, %26, %27, %28, %29, %30 in 0 : vector<8x128xbf16>, vector<8x128xbf16>, vector<8x128xbf16>, vector<8x128xbf16>, vector<8x128xbf16>, vector<8x128xbf16>, vector<8x128xbf16> -> vector<56x128xbf16>
    %cst_41 = arith.constant dense<0.000000e+00> : vector<16x128xf32>
    %32 = tpu.matmul %8, %31, %cst_41 {dimension_numbers = #tpu.dot_dimension_numbers<[1], [0], [0], [1], [0, 0, 1, 1], [], []>} : vector<16x56xbf16>, vector<56x128xbf16>, vector<16x128xf32> -> vector<16x128xf32>
    %33 = vector.broadcast %11 : vector<16x1xf32> to vector<16x128xf32>
    %34 = arith.mulf %32, %33 : vector<16x128xf32>
    %35 = vector.broadcast %13 : vector<16x1xf32> to vector<16x128xf32>
    %36 = arith.addf %34, %35 : vector<16x128xf32>
    %cst_42 = arith.constant 5.000000e-01 : f32
    %37 = vector.broadcast %cst_42 : f32 to vector<16x128xf32>
    %38 = arith.mulf %37, %36 : vector<16x128xf32>
    %39 = math.tanh %38 : vector<16x128xf32>
    %cst_43 = arith.constant 5.000000e-01 : f32
    %40 = vector.broadcast %cst_43 : f32 to vector<16x128xf32>
    %41 = arith.mulf %40, %39 : vector<16x128xf32>
    %cst_44 = arith.constant 5.000000e-01 : f32
    %42 = vector.broadcast %cst_44 : f32 to vector<16x128xf32>
    %43 = arith.addf %41, %42 : vector<16x128xf32>
    %44 = arith.truncf %43 : vector<16x128xf32> to vector<16x128xbf16>
    %c0_45 = arith.constant 0 : index
    %c128_46 = arith.constant 128 : index
    %45 = vector.load %arg8[%c0_45, %c128_46] : memref<16x259xbf16, #tpu.memory_space<vmem>>, vector<16x128xbf16>
    tpu.vector_store %arg8[%c0_45, %c128_46], %44 {strides = array<i32>} : memref<16x259xbf16, #tpu.memory_space<vmem>>, vector<16x128xbf16>,
    %c0_47 = arith.constant 0 : index
    %c125_48 = arith.constant 125 : index
    %46 = vector.load %arg8[%c0_47, %c125_48] : memref<16x259xbf16, #tpu.memory_space<vmem>>, vector<16x128xbf16>
    %c0_49 = arith.constant 0 : index
    %c126_50 = arith.constant 126 : index
    %47 = vector.load %arg8[%c0_49, %c126_50] : memref<16x259xbf16, #tpu.memory_space<vmem>>, vector<16x128xbf16>
    %c0_51 = arith.constant 0 : index
    %c127_52 = arith.constant 127 : index
    %48 = vector.load %arg8[%c0_51, %c127_52] : memref<16x259xbf16, #tpu.memory_space<vmem>>, vector<16x128xbf16>
    %c0_53 = arith.constant 0 : index
    %c128_54 = arith.constant 128 : index
    %49 = vector.load %arg8[%c0_53, %c128_54] : memref<16x259xbf16, #tpu.memory_space<vmem>>, vector<16x128xbf16>
    %c0_55 = arith.constant 0 : index
    %c129_56 = arith.constant 129 : index
    %50 = vector.load %arg8[%c0_55, %c129_56] : memref<16x259xbf16, #tpu.memory_space<vmem>>, vector<16x128xbf16>
    %c0_57 = arith.constant 0 : index
    %c130_58 = arith.constant 130 : index
    %51 = vector.load %arg8[%c0_57, %c130_58] : memref<16x259xbf16, #tpu.memory_space<vmem>>, vector<16x128xbf16>
    %c0_59 = arith.constant 0 : index
    %c131_60 = arith.constant 131 : index
    %52 = vector.load %arg8[%c0_59, %c131_60] : memref<16x259xbf16, #tpu.memory_space<vmem>>, vector<16x128xbf16>
    %53 = tpu.concatenate %46, %47, %48, %49, %50, %51, %52 in 0 : vector<16x128xbf16>, vector<16x128xbf16>, vector<16x128xbf16>, vector<16x128xbf16>, vector<16x128xbf16>, vector<16x128xbf16>, vector<16x128xbf16> -> vector<112x128xbf16>
    %cst_61 = arith.constant dense<0.000000e+00> : vector<16x128xf32>
    %54 = tpu.matmul %9, %53, %cst_61 {dimension_numbers = #tpu.dot_dimension_numbers<[1], [0], [0], [1], [0, 0, 1, 1], [], []>} : vector<16x112xbf16>, vector<112x128xbf16>, vector<16x128xf32> -> vector<16x128xf32>
    %55 = vector.broadcast %15 : vector<16x1xf32> to vector<16x128xf32>
    %56 = arith.mulf %54, %55 : vector<16x128xf32>
    %57 = vector.broadcast %17 : vector<16x1xf32> to vector<16x128xf32>
    %58 = arith.addf %56, %57 : vector<16x128xf32>
    %cst_62 = arith.constant 5.000000e-01 : f32
    %59 = vector.broadcast %cst_62 : f32 to vector<16x128xf32>
    %60 = arith.mulf %59, %58 : vector<16x128xf32>
    %61 = math.tanh %60 : vector<16x128xf32>
    %cst_63 = arith.constant 5.000000e-01 : f32
    %62 = vector.broadcast %cst_63 : f32 to vector<16x128xf32>
    %63 = arith.mulf %62, %61 : vector<16x128xf32>
    %cst_64 = arith.constant 5.000000e-01 : f32
    %64 = vector.broadcast %cst_64 : f32 to vector<16x128xf32>
    %65 = arith.addf %63, %64 : vector<16x128xf32>
    %c0_65 = arith.constant 0 : index
    %c0_66 = arith.constant 0 : index
    %c0_67 = arith.constant 0 : index
    %66 = vector.load %arg6[%c0_65, %c0_66, %c0_67] : memref<2x16x128xf32, #tpu.memory_space<vmem>>, vector<1x16x128xf32>
    %67 = vector.shape_cast %66 : vector<1x16x128xf32> to vector<16x128xf32>
    %68 = vector.shape_cast %65 : vector<16x128xf32> to vector<1x16x128xf32>
    tpu.vector_store %arg6[%c0_65, %c0_66, %c0_67], %68 {strides = array<i32>} : memref<2x16x128xf32, #tpu.memory_space<vmem>>, vector<1x16x128xf32>,
    %c1_68 = arith.constant 1 : index
    %c0_69 = arith.constant 0 : index
    %c0_70 = arith.constant 0 : index
    %c0_71 = arith.constant 0 : index
    %69 = vector.load %arg1[%c1_68, %c0_69, %c0_70, %c0_71] : memref<2x2x8x128xbf16, #tpu.memory_space<vmem>>, vector<1x1x8x128xbf16>
    %70 = vector.shape_cast %69 : vector<1x1x8x128xbf16> to vector<8x128xbf16>
    %c1_72 = arith.constant 1 : index
    %c1_73 = arith.constant 1 : index
    %c0_74 = arith.constant 0 : index
    %c0_75 = arith.constant 0 : index
    %71 = vector.load %arg1[%c1_72, %c1_73, %c0_74, %c0_75] : memref<2x2x8x128xbf16, #tpu.memory_space<vmem>>, vector<1x1x8x128xbf16>
    %72 = vector.shape_cast %71 : vector<1x1x8x128xbf16> to vector<8x128xbf16>
    %73 = arith.maximumf %70, %72 : vector<8x128xbf16>
    %c0_76 = arith.constant 0 : index
    %c128_77 = arith.constant 128 : index
    %74 = vector.load %arg7[%c0_76, %c128_77] : memref<8x259xbf16, #tpu.memory_space<vmem>>, vector<8x128xbf16>
    tpu.vector_store %arg7[%c0_76, %c128_77], %73 {strides = array<i32>} : memref<8x259xbf16, #tpu.memory_space<vmem>>, vector<8x128xbf16>,
    %c0_78 = arith.constant 0 : index
    %c125_79 = arith.constant 125 : index
    %75 = vector.load %arg7[%c0_78, %c125_79] : memref<8x259xbf16, #tpu.memory_space<vmem>>, vector<8x128xbf16>
    %c0_80 = arith.constant 0 : index
    %c126_81 = arith.constant 126 : index
    %76 = vector.load %arg7[%c0_80, %c126_81] : memref<8x259xbf16, #tpu.memory_space<vmem>>, vector<8x128xbf16>
    %c0_82 = arith.constant 0 : index
    %c127_83 = arith.constant 127 : index
    %77 = vector.load %arg7[%c0_82, %c127_83] : memref<8x259xbf16, #tpu.memory_space<vmem>>, vector<8x128xbf16>
    %c0_84 = arith.constant 0 : index
    %c128_85 = arith.constant 128 : index
    %78 = vector.load %arg7[%c0_84, %c128_85] : memref<8x259xbf16, #tpu.memory_space<vmem>>, vector<8x128xbf16>
    %c0_86 = arith.constant 0 : index
    %c129_87 = arith.constant 129 : index
    %79 = vector.load %arg7[%c0_86, %c129_87] : memref<8x259xbf16, #tpu.memory_space<vmem>>, vector<8x128xbf16>
    %c0_88 = arith.constant 0 : index
    %c130_89 = arith.constant 130 : index
    %80 = vector.load %arg7[%c0_88, %c130_89] : memref<8x259xbf16, #tpu.memory_space<vmem>>, vector<8x128xbf16>
    %c0_90 = arith.constant 0 : index
    %c131_91 = arith.constant 131 : index
    %81 = vector.load %arg7[%c0_90, %c131_91] : memref<8x259xbf16, #tpu.memory_space<vmem>>, vector<8x128xbf16>
    %82 = tpu.concatenate %75, %76, %77, %78, %79, %80, %81 in 0 : vector<8x128xbf16>, vector<8x128xbf16>, vector<8x128xbf16>, vector<8x128xbf16>, vector<8x128xbf16>, vector<8x128xbf16>, vector<8x128xbf16> -> vector<56x128xbf16>
    %cst_92 = arith.constant dense<0.000000e+00> : vector<16x128xf32>
    %83 = tpu.matmul %8, %82, %cst_92 {dimension_numbers = #tpu.dot_dimension_numbers<[1], [0], [0], [1], [0, 0, 1, 1], [], []>} : vector<16x56xbf16>, vector<56x128xbf16>, vector<16x128xf32> -> vector<16x128xf32>
    %84 = vector.broadcast %11 : vector<16x1xf32> to vector<16x128xf32>
    %85 = arith.mulf %83, %84 : vector<16x128xf32>
    %86 = vector.broadcast %13 : vector<16x1xf32> to vector<16x128xf32>
    %87 = arith.addf %85, %86 : vector<16x128xf32>
    %cst_93 = arith.constant 5.000000e-01 : f32
    %88 = vector.broadcast %cst_93 : f32 to vector<16x128xf32>
    %89 = arith.mulf %88, %87 : vector<16x128xf32>
    %90 = math.tanh %89 : vector<16x128xf32>
    %cst_94 = arith.constant 5.000000e-01 : f32
    %91 = vector.broadcast %cst_94 : f32 to vector<16x128xf32>
    %92 = arith.mulf %91, %90 : vector<16x128xf32>
    %cst_95 = arith.constant 5.000000e-01 : f32
    %93 = vector.broadcast %cst_95 : f32 to vector<16x128xf32>
    %94 = arith.addf %92, %93 : vector<16x128xf32>
    %95 = arith.truncf %94 : vector<16x128xf32> to vector<16x128xbf16>
    %c0_96 = arith.constant 0 : index
    %c128_97 = arith.constant 128 : index
    %96 = vector.load %arg8[%c0_96, %c128_97] : memref<16x259xbf16, #tpu.memory_space<vmem>>, vector<16x128xbf16>
    tpu.vector_store %arg8[%c0_96, %c128_97], %95 {strides = array<i32>} : memref<16x259xbf16, #tpu.memory_space<vmem>>, vector<16x128xbf16>,
    %c0_98 = arith.constant 0 : index
    %c125_99 = arith.constant 125 : index
    %97 = vector.load %arg8[%c0_98, %c125_99] : memref<16x259xbf16, #tpu.memory_space<vmem>>, vector<16x128xbf16>
    %c0_100 = arith.constant 0 : index
    %c126_101 = arith.constant 126 : index
    %98 = vector.load %arg8[%c0_100, %c126_101] : memref<16x259xbf16, #tpu.memory_space<vmem>>, vector<16x128xbf16>
    %c0_102 = arith.constant 0 : index
    %c127_103 = arith.constant 127 : index
    %99 = vector.load %arg8[%c0_102, %c127_103] : memref<16x259xbf16, #tpu.memory_space<vmem>>, vector<16x128xbf16>
    %c0_104 = arith.constant 0 : index
    %c128_105 = arith.constant 128 : index
    %100 = vector.load %arg8[%c0_104, %c128_105] : memref<16x259xbf16, #tpu.memory_space<vmem>>, vector<16x128xbf16>
    %c0_106 = arith.constant 0 : index
    %c129_107 = arith.constant 129 : index
    %101 = vector.load %arg8[%c0_106, %c129_107] : memref<16x259xbf16, #tpu.memory_space<vmem>>, vector<16x128xbf16>
    %c0_108 = arith.constant 0 : index
    %c130_109 = arith.constant 130 : index
    %102 = vector.load %arg8[%c0_108, %c130_109] : memref<16x259xbf16, #tpu.memory_space<vmem>>, vector<16x128xbf16>
    %c0_110 = arith.constant 0 : index
    %c131_111 = arith.constant 131 : index
    %103 = vector.load %arg8[%c0_110, %c131_111] : memref<16x259xbf16, #tpu.memory_space<vmem>>, vector<16x128xbf16>
    %104 = tpu.concatenate %97, %98, %99, %100, %101, %102, %103 in 0 : vector<16x128xbf16>, vector<16x128xbf16>, vector<16x128xbf16>, vector<16x128xbf16>, vector<16x128xbf16>, vector<16x128xbf16>, vector<16x128xbf16> -> vector<112x128xbf16>
    %cst_112 = arith.constant dense<0.000000e+00> : vector<16x128xf32>
    %105 = tpu.matmul %9, %104, %cst_112 {dimension_numbers = #tpu.dot_dimension_numbers<[1], [0], [0], [1], [0, 0, 1, 1], [], []>} : vector<16x112xbf16>, vector<112x128xbf16>, vector<16x128xf32> -> vector<16x128xf32>
    %106 = vector.broadcast %15 : vector<16x1xf32> to vector<16x128xf32>
    %107 = arith.mulf %105, %106 : vector<16x128xf32>
    %108 = vector.broadcast %17 : vector<16x1xf32> to vector<16x128xf32>
    %109 = arith.addf %107, %108 : vector<16x128xf32>
    %cst_113 = arith.constant 5.000000e-01 : f32
    %110 = vector.broadcast %cst_113 : f32 to vector<16x128xf32>
    %111 = arith.mulf %110, %109 : vector<16x128xf32>
    %112 = math.tanh %111 : vector<16x128xf32>
    %cst_114 = arith.constant 5.000000e-01 : f32
    %113 = vector.broadcast %cst_114 : f32 to vector<16x128xf32>
    %114 = arith.mulf %113, %112 : vector<16x128xf32>
    %cst_115 = arith.constant 5.000000e-01 : f32
    %115 = vector.broadcast %cst_115 : f32 to vector<16x128xf32>
    %116 = arith.addf %114, %115 : vector<16x128xf32>
    %c1_116 = arith.constant 1 : index
    %c0_117 = arith.constant 0 : index
    %c0_118 = arith.constant 0 : index
    %117 = vector.load %arg6[%c1_116, %c0_117, %c0_118] : memref<2x16x128xf32, #tpu.memory_space<vmem>>, vector<1x16x128xf32>
    %118 = vector.shape_cast %117 : vector<1x16x128xf32> to vector<16x128xf32>
    %119 = vector.shape_cast %116 : vector<16x128xf32> to vector<1x16x128xf32>
    tpu.vector_store %arg6[%c1_116, %c0_117, %c0_118], %119 {strides = array<i32>} : memref<2x16x128xf32, #tpu.memory_space<vmem>>, vector<1x16x128xf32>,
    return
  }
  func.func @transform_0(%arg0: i32) -> (i32, i32, i32, i32) {
    %c0_i32 = arith.constant 0 : i32
    %c0_i32_0 = arith.constant 0 : i32
    %c0_i32_1 = arith.constant 0 : i32
    %c0_i32_2 = arith.constant 0 : i32
    return %arg0, %c0_i32, %c0_i32_0, %c0_i32_1 : i32, i32, i32, i32
  }
  func.func @transform_1(%arg0: i32) -> (i32, i32) {
    %c0_i32 = arith.constant 0 : i32
    %c0_i32_0 = arith.constant 0 : i32
    %c0_i32_1 = arith.constant 0 : i32
    return %c0_i32, %c0_i32_0 : i32, i32
  }
  func.func @transform_2(%arg0: i32) -> (i32, i32, i32) {
    %c0_i32 = arith.constant 0 : i32
    %c0_i32_0 = arith.constant 0 : i32
    %c0_i32_1 = arith.constant 0 : i32
    %c0_i32_2 = arith.constant 0 : i32
    return %c0_i32, %c0_i32_0, %c0_i32_1 : i32, i32, i32
  }
  func.func @transform_3(%arg0: i32) -> (i32, i32) {
    %c0_i32 = arith.constant 0 : i32
    %c0_i32_0 = arith.constant 0 : i32
    %c0_i32_1 = arith.constant 0 : i32
    return %c0_i32, %c0_i32_0 : i32, i32
  }
  func.func @transform_4(%arg0: i32) -> (i32, i32, i32) {
    %c0_i32 = arith.constant 0 : i32
    %c0_i32_0 = arith.constant 0 : i32
    %c0_i32_1 = arith.constant 0 : i32
    %c0_i32_2 = arith.constant 0 : i32
    return %c0_i32, %c0_i32_0, %c0_i32_1 : i32, i32, i32
  }
  func.func @transform_5(%arg0: i32) -> (i32, i32, i32) {
    %c0_i32 = arith.constant 0 : i32
    %c0_i32_0 = arith.constant 0 : i32
    %c0_i32_1 = arith.constant 0 : i32
    return %arg0, %c0_i32, %c0_i32_0 : i32, i32, i32
  }
}

</mosaic_0001>

<bundles_post_ra>
// kernel: down_forward.1
= control target key start
LH: loop header
LB: loop body
LE: loop exit
PB: predicated region body
PF: predicated region fallthrough
CT: control target
= control target key end

     0   :  { %10 = vsyncpa [#allocation5], 0  ;;  %s1466_s0 = inlined_call_operand.vmem [shape: bf16[4,2,8,128], index: 0, kind: input, shape index: {}]   ;;  %s1467_s1 = inlined_call_operand.vmem [shape: bf16[16,56], index: 1, kind: input, shape index: {}]   ;;  %s1468_s2 = inlined_call_operand.vmem [shape: f32[2,16,1], index: 2, kind: input, shape index: {}]   ;;  %s1469_s3 = inlined_call_operand.vmem [shape: bf16[16,112], index: 3, kind: input, shape index: {}]   ;;  %s1470_s4 = inlined_call_operand.vmem [shape: f32[2,16,1], index: 4, kind: input, shape index: {}]   ;;  %s1471_s5 = inlined_call_operand.hbm [shape: f32[4,16,128], index: 5, kind: output, shape index: {}]  }
   0x1   :  { %12 = vsyncpa [#allocation5 + $0x1], 0  ;;  %s1171_s18 = smov 0   ;;  %s1173_s19 = smov 0  }
   0x2   :  { %s1175_s20 = smov 0   ;;  %s1177_s21 = smov 0  }
   0x3 LB: > { %s1192_s22 = sadd.s32 4294967295, %s1129_s21   ;;  %s900_s23 = sadd.s32 4294967294, %s1129_s21   ;;  %s1129_s21 = sphi %s1177_s21, %s1477_s21   ;;  %s1125_s20 = sphi %s1175_s20, %s1476_s20   ;;  %s1121_s19 = sphi %s1173_s19, %s1475_s19   ;;  %s1117_s18 = sphi %s1171_s18, %s1474_s18  }
   0x4   : > { %s1196_s24 = sadd.s32 1, %s1129_s21   ;;  %s135_s25 = sadd.s32 1, %s1125_s20 }
   0x5   : > { %s132_s26 = ssub.s32 %s1129_s21, %s1196_s24  ;;  %p145_p0 = scmp.ne.s32.totalorder %s1125_s20, %s1121_s19 }
   0x6   : > { %p133_p1 = scmp.eq.s32.totalorder %s132_s26, 0  ;;  %p146_p2 = scmp.eq.s32.totalorder %s1192_s22, 1 }
   0x7   : > { %p151_p3 = scmp.ne.s32.totalorder %s1121_s19, %s1117_s18  ;;  %p152_p4 = scmp.eq.s32.totalorder %s900_s23, 1 }
   0x8   : > { %s1207_s27 = scalar_select %p133_p1, %s1125_s20, %s135_s25  }
   0x9   : > { %p1209_p5 = por %p146_p2, %p145_p0  ;;  %p1213_p6 = por %p152_p4, %p151_p3 }
   0xa   : > { %p903_p7 = scmp.ge.s32.totalorder %s1129_s21, 1  ;;  %p192_p8 = scmp.lt.s32.totalorder %s1129_s21, 3 }
   0xc   : > { %p193_p9 = pnand %p903_p7, %p192_p8 }
   0xd   : > { %s905_s30 = sshll.u32 (!%p193_p9), %s1192_s22, 1  ;;  %s1132_s10 = smov (!%p193_p9), 123  }
   0xe   : > { %196 = sbr.rel (%p193_p9) target bundleno = 979 (0x3d3), region = 40  ;;  %p222_p10 = scmp.lt.s32.totalorder (!%p193_p9), %s905_s30, 3 }
   0xf   : > { %s1133_s11 = smov (!%p193_p9), 122   ;;  %s1134_s12 = smov (!%p193_p9), 124  }
  0x10   : > { %s1135_s13 = smov (!%p193_p9), 126   ;;  %s1136_s14 = smov (!%p193_p9), 125  }
  0x11   : > { %s1137_s15 = smov (!%p193_p9), 127   ;;  %s1138_s16 = smov (!%p193_p9), 3  }
  0x12   : > { %s989_s8 = sshll.u32 (!%p193_p9), %s1192_s22, 5  ;;  %s1087_s25 = scalar_lea.hbm (!%p193_p9), %s1471_s5, 64 }
  0x13   : > { %vm232_vm0 = vcmask 19456   ;;  %v1131_v0 = vmov 0   ;;  %vm230_vm1 = vcmask 1044456   ;;  %s1479_s30 = smov (!%p222_p10, %s905_s30), 3  ;;  %vm306_vm2 = vcmask 998400  }
  0x14   : > { %233 = vst.msk [vmem:[#allocation2 + $0x8] sm:$0xf] %vm232_vm0, %v1131_v0  ;;  %1049 = vset.pattern.permute.xlu0 %v1131_v0  ;;  %1050 = vset.pattern.permute.xlu1 %v1131_v0  ;;  %s975_s6 = sshll.u32 %s1479_s30, 3  ;;  %vm308_vm3 = vcmask 1043456   ;;  %vm294_vm4 = vcmask 1014784   ;;  %vm300_vm5 = vcmask 1006592  }
  0x15   : > { %236 = vst.msk [vmem:[#allocation3 + $0x8] sm:$0xf] %vm232_vm0, %v1131_v0  ;;  %1048 = vset.pattern.permute.xlu2 %v1131_v0  ;;  %s226_s9 = scalar_lea.vmem %s1466_s0, %s975_s6  ;;  %vm278_vm6 = vcmask 1031168   ;;  %vm272_vm7 = vcmask 1039360   ;;  %vm353_vm8 = vcmask 23552   ;;  %vm361_vm9 = vcmask 457728  }
  0x16   : > { %237 = vst.msk [vmem:[#allocation3 + $0x14] sm:$0xf] %vm232_vm0, %v1131_v0  ;;  %v991_v1 = vld [vmem:[%s226_s9] sm:$0xff]   ;;  %v998_v2 = vld [vmem:[%s226_s9 + $0x8] sm:$0xff]   ;;  %vm516_vm10 = vcmask 916480   ;;  %s218_s30 = sand.u32 1, %s1121_s19  }
  0x17   : > { %231 = vst.msk [vmem:[#allocation2] sm:$0xf] %vm230_vm1, %v1131_v0  ;;  %v992_v3 = vunpack.c.l.bf16 %v991_v1  ;;  %v993_v4 = vunpack.c.h.bf16 %v991_v1  ;;  %v996_v6 = vunpack.c.l.bf16 %v998_v2  ;;  %v997_v7 = vunpack.c.h.bf16 %v998_v2  ;;  %s904_s6 = sshll.u32 %s218_s30, 5  ;;  %s822_s22 = scalar_lea.sflag [#allocation5], %s218_s30 }
  0x18   : > { %234 = vst.msk [vmem:[#allocation3] sm:$0xf] %vm230_vm1, %v1131_v0  ;;  %s220_s7 = scalar_lea.vmem [#allocation4], %s904_s6 }
  0x19   : > { %235 = vst.msk [vmem:[#allocation3 + $0xc] sm:$0xf] %vm230_vm1, %v1131_v0  ;;  %v257_v5 = vmax.f32 %v992_v3, %v993_v4  ;;  %v574_v9 = vmax.f32 %v996_v6, %v997_v7 }
  0x1b   : > { %v258_v8 = vpack.c.bf16 %v257_v5, %v257_v5  ;;  %v575_v10 = vpack.c.bf16 %v574_v9, %v574_v9 }
  0x1d   : > { %259 = vst [vmem:[#allocation2 + $0x4] sm:$0xf] %v258_v8 }
  0x24   : > { %v262_v11 = vld [vmem:[#allocation2 + $0x4] sm:$0xff] }
  0x25   : > { %v260_v12 = vld [vmem:[#allocation2] sm:$0xff]  ;;  %v287_v14 = vunpack.c.h.b16 %v262_v11  ;;  %v286_v15 = vunpack.c.l.b16 %v262_v11 }
  0x26   : > { %v261_v13 = vld [vmem:[#allocation2 + $0x4] sm:$0xf]  ;;  %v265_v18 = vunpack.c.h.b16 %v260_v12  ;;  %v264_v26 = vunpack.c.l.b16 %v260_v12 }
  0x27   : > { %576 = vst [vmem:[#allocation2 + $0x4] sm:$0xf] %v575_v10  ;;  %v289_v16 = vpack.c.b16 %v287_v14, %v287_v14  ;;  %v288_v17 = vpack.c.b16 %v286_v15, %v286_v15  ;;  %v281_v22 = vunpack.c.l.b16 %v261_v13 }
  0x28   : > { %v1226_v19 = vpack.c.b16 %v265_v18, %v265_v18  ;;  %v1235_v28 = vpack.c.b16 %v264_v26, %v264_v26 }
  0x29   : > { %298 = vrot.lane.b32.xlu1 %v289_v16, %s1132_s10  ;;  %302 = vrot.lane.b32.xlu0 %v288_v17, %s1133_s11  ;;  %v282_v24 = vpack.c.b16 %v281_v22, %v281_v22 }
  0x2a   : > { %290 = vrot.lane.b32.xlu2 %v288_v17, %s1134_s12 }
  0x2e   : > { %v579_v20 = vld [vmem:[#allocation2 + $0x4] sm:$0xff] }
  0x2f   : > { %v601_v21 = vunpack.c.l.b16 %v579_v20  ;;  %v602_v25 = vunpack.c.h.b16 %v579_v20  ;;  %v577_v29 = vld [vmem:[#allocation2] sm:$0xff] }
  0x30   : > { %v578_v30 = vld [vmem:[#allocation2 + $0x4] sm:$0xf]  ;;  %v582_v31 = vunpack.c.h.b16 %v577_v29  ;;  %v581_v32 = vunpack.c.l.b16 %v577_v29  ;;  %v243_v29 = vld [vmem:[%s1468_s2 + $0x8] sm:$0xff] }
  0x31   : > { %304 = vrot.lane.b32.xlu0 %v289_v16, %s1133_s11  ;;  %276 = vrot.lane.b32.xlu1 %v1226_v19, %s1135_s13  ;;  %v603_v23 = vpack.c.b16 %v601_v21, %v601_v21  ;;  %v604_v27 = vpack.c.b16 %v602_v25, %v602_v25  ;;  %v596_v33 = vunpack.c.l.b16 %v578_v30  ;;  %v908_v30 = vld [vmem:[%s1468_s2 + $0x10] sm:$0xff] }
  0x32   : > { %292 = vrot.lane.b32.xlu2 %v289_v16, %s1134_s12  ;;  %v1244_v34 = vpack.c.b16 %v582_v31, %v582_v31  ;;  %v1246_v35 = vpack.c.b16 %v581_v32, %v581_v32  ;;  %v242_v31 = vld [vmem:[%s1468_s2] sm:$0xff] }
  0x33   : > { %v597_v36 = vpack.c.b16 %v596_v33, %v596_v33 }
  0x39   : > { %296 = vrot.lane.b32.xlu0 %v288_v17, %s1132_s10  ;;  %615 = vrot.lane.b32.xlu1 %v603_v23, %s1133_s11 }
  0x3a   : > { %283 = vrot.lane.b32.xlu2 %v282_v24, %s1136_s14 }
  0x41   : > { %617 = vrot.lane.b32.xlu1 %v604_v27, %s1133_s11  ;;  %274 = vrot.lane.b32.xlu0 %v1235_v28, %s1135_s13 }
  0x42   : > { %605 = vrot.lane.b32.xlu2 %v603_v23, %s1134_s12 }
  0x49   : > { %610 = vrot.lane.b32.xlu1 %v603_v23, %s1132_s10  ;;  %607 = vrot.lane.b32.xlu0 %v604_v27, %s1134_s12 }
  0x4a   : > { %612 = vrot.lane.b32.xlu2 %v604_v27, %s1132_s10 }
  0x51   : > { %592 = vrot.lane.b32.xlu1 %v1244_v34, %s1135_s13  ;;  %590 = vrot.lane.b32.xlu0 %v1246_v35, %s1135_s13 }
  0x52   : > { %598 = vrot.lane.b32.xlu2 %v597_v36, %s1136_s14  ;;  %v909_v36 = vld [vmem:[%s1468_s2 + $0x18] sm:$0xff] }
  0x59   : > { %270 = vrot.lane.b32.xlu1 %v1226_v19, %s1137_s15  ;;  %268 = vrot.lane.b32.xlu0 %v1235_v28, %s1137_s15 }
  0x5a   : > { %585 = vrot.lane.b32.xlu2 %v1246_v35, %s1137_s15 }
  0x61   : > { %587 = vrot.lane.b32.xlu0 %v1244_v34, %s1137_s15 }
  0x84   : > { %v291_v37 = vpop.permute.xlu2 %290 }
  0x8c   : > { %v293_v38 = vpop.permute.xlu2 %292 }
  0x8d   : > { %v295_v46 = vsel %vm294_vm4, %v291_v37, %v293_v38 }
  0x94   : > { %v284_v41 = vpop.permute.xlu2 %283 }
  0x9b   : > { %v299_v39 = vpop.permute.xlu1 %298  ;;  %v303_v40 = vpop.permute.xlu0 %302 }
  0x9c   : > { %349 = vrot.lane.b32.xlu1 %v303_v40, %s1138_s16  ;;  %v606_v52 = vpop.permute.xlu2 %605 }
  0xa3   : > { %v305_v42 = vpop.permute.xlu0 %304  ;;  %v277_v43 = vpop.permute.xlu1 %276 }
  0xa4   : > { %v307_v44 = vsel %vm306_vm2, %v303_v40, %v305_v42  ;;  %v319_v45 = vsel %vm308_vm3, %v277_v43, %v284_v41  ;;  %v613_v57 = vpop.permute.xlu2 %612 }
  0xa5   : > { %351 = vrot.lane.b32.xlu2 %v307_v44, %s1138_s16  ;;  %343 = vrot.lane.b32.xlu1 %v319_v45, %s1138_s16 }
  0xab   : > { %v297_v47 = vpop.permute.xlu0 %296  ;;  %v616_v48 = vpop.permute.xlu1 %615 }
  0xac   : > { %v301_v49 = vsel %vm300_vm5, %v297_v47, %v299_v39  ;;  %v322_v50 = vsel %vm308_vm3, %v291_v37, %v297_v47  ;;  %v599_v63 = vpop.permute.xlu2 %598 }
  0xad   : > { %345 = vrot.lane.b32.xlu2 %v322_v50, %s1138_s16  ;;  %v325_v51 = vsel %vm308_vm3, %v295_v46, %v301_v49  ;;  %v962_v49 = vld [vmem:[#allocation3 + $0x10] sm:$0xf0] }
  0xae   : > { %347 = vrot.lane.b32.xlu0 %v325_v51, %s1138_s16  ;;  %v981_v51 = vld [vmem:[#allocation3 + $0x8] sm:$0xf] }
  0xb3   : > { %v618_v53 = vpop.permute.xlu1 %617  ;;  %v275_v54 = vpop.permute.xlu0 %274 }
  0xb4   : > { %v279_v55 = vsel %vm278_vm6, %v275_v54, %v277_v43  ;;  %v586_v10 = vpop.permute.xlu2 %585  ;;  %v619_v13 = vsel %vm306_vm2, %v616_v48, %v618_v53  ;;  %v948_v54 = vld [vmem:[#allocation3] sm:$0xf] }
  0xb5   : > { %v317_v56 = vsel %vm308_vm3, %v279_v55, %v284_v41  ;;  %v984_v55 = vld [vmem:[#allocation3 + $0x8] sm:$0xf0] }
  0xb6   : > { %341 = vrot.lane.b32.xlu0 %v317_v56, %s1138_s16  ;;  %v1335_v56 = vor.u32 %v984_v55, %v948_v54 }
  0xbb   : > { %v611_v58 = vpop.permute.xlu1 %610  ;;  %v608_v59 = vpop.permute.xlu0 %607 }
  0xbc   : > { %v614_v60 = vsel %vm300_vm5, %v611_v58, %v613_v57  ;;  %v609_v61 = vsel %vm294_vm4, %v606_v52, %v608_v59  ;;  %v633_v15 = vsel %vm308_vm3, %v606_v52, %v611_v58  ;;  %v934_v52 = vld [vmem:[#allocation3 + $0x10] sm:$0xf0]  ;;  %v920_v57 = vld [vmem:[#allocation3] sm:$0xf]  ;;  %v979_v58 = vld [vmem:[#allocation3 + $0x8] sm:$0xf0] }
  0xbd   : > { %v636_v62 = vsel %vm308_vm3, %v609_v61, %v614_v60  ;;  %v937_v53 = vor.u32 %v981_v51, %v934_v52  ;;  %v1340_v59 = vor.u32 %v979_v58, %v920_v57 }
  0xbe   : > { %655 = vrot.lane.b32.xlu0 %v616_v48, %s1138_s16  ;;  %653 = vrot.lane.b32.xlu2 %v636_v62, %s1138_s16  ;;  %v986_v48 = vld [vmem:[#allocation3 + $0x8] sm:$0xf] }
  0xbf   : > { %v965_v50 = vor.u32 %v986_v48, %v962_v49 }
  0xc3   : > { %v593_v0 = vpop.permute.xlu1 %592  ;;  %v591_v1 = vpop.permute.xlu0 %590 }
  0xc4   : > { %v594_v2 = vsel %vm278_vm6, %v591_v1, %v593_v0  ;;  %v630_v3 = vsel %vm308_vm3, %v593_v0, %v599_v63 }
  0xc5   : > { %v628_v4 = vsel %vm308_vm3, %v594_v2, %v599_v63 }
  0xc6   : > { %649 = vrot.lane.b32.xlu0 %v630_v3, %s1138_s16  ;;  %647 = vrot.lane.b32.xlu2 %v628_v4, %s1138_s16 }
  0xcb   : > { %v271_v5 = vpop.permute.xlu1 %270  ;;  %v269_v6 = vpop.permute.xlu0 %268 }
  0xcc   : > { %v273_v7 = vsel %vm272_vm7, %v269_v6, %v271_v5  ;;  %v314_v8 = vsel %vm308_vm3, %v1226_v19, %v271_v5 }
  0xcd   : > { %v311_v9 = vsel %vm308_vm3, %v1235_v28, %v273_v7 }
  0xce   : > { %339 = vrot.lane.b32.xlu2 %v314_v8, %s1138_s16  ;;  %337 = vrot.lane.b32.xlu1 %v311_v9, %s1138_s16 }
  0xd3   : > { %v588_v11 = vpop.permute.xlu0 %587 }
  0xd4   : > { %v589_v12 = vsel %vm272_vm7, %v586_v10, %v588_v11  ;;  %v625_v16 = vsel %vm308_vm3, %v1244_v34, %v588_v11 }
  0xd5   : > { %v622_v14 = vsel %vm308_vm3, %v1246_v35, %v589_v12  ;;  %v976_v35 = vld [vmem:[%s1467_s1] sm:$0xff] }
  0xd6   : > { %657 = vrot.lane.b32.xlu1 %v619_v13, %s1138_s16  ;;  %643 = vrot.lane.b32.xlu0 %v622_v14, %s1138_s16 }
  0xd7   : > { %384 = vperm.xlu2 %1048, %v242_v31  }
  0xde   : > { %651 = vrot.lane.b32.xlu1 %v633_v15, %s1138_s16  ;;  %389 = vperm.xlu0 %1049, %v243_v29  }
  0xdf   : > { %401 = vperm.xlu2 %1048, %v909_v36  }
  0xe6   : > { %645 = vrot.lane.b32.xlu1 %v625_v16, %s1138_s16  ;;  %469 = vrot.lane.b32.xlu0 %v937_v53, %s1133_s11 }
  0xe7   : > { %750 = vrot.lane.b32.xlu2 %v965_v50, %s1133_s11 }
  0xee   : > { %396 = vperm.xlu1 %1050, %v908_v30   ;;  %459 = vrot.lane.b32.xlu0 %v937_v53, %s1134_s12 }
  0xef   : > { %740 = vrot.lane.b32.xlu2 %v965_v50, %s1134_s12 }
  0xf6   : > { %745 = vrot.lane.b32.xlu1 %v965_v50, %s1132_s10  ;;  %432 = vrot.lane.b32.xlu0 %v1340_v59, %s1137_s15 }
  0xf7   : > { %718 = vrot.lane.b32.xlu2 %v1335_v56, %s1135_s13 }
  0xfe   : > { %464 = vrot.lane.b32.xlu1 %v937_v53, %s1132_s10 }
  0xff   : > { %v352_v17 = vpop.permute.xlu2 %351  ;;  %713 = vrot.lane.b32.xlu2 %v1335_v56, %s1137_s15 }
 0x106   : > { %437 = vrot.lane.b32.xlu1 %v1340_v59, %s1135_s13 }
 0x107   : > { %v346_v21 = vpop.permute.xlu2 %345 }
 0x10e   : > { %v350_v18 = vpop.permute.xlu1 %349 }
 0x10f   : > { %v357_v19 = vsel %vm353_vm8, %v350_v18, %v352_v17 }
 0x110   : > { %v366_v20 = vsel %vm308_vm3, %v357_v19, 0 }
 0x111   : > { %372 = vmatpush.bf16.msra.mxu0 %v366_v20 }
 0x117   : > { %v344_v24 = vpop.permute.xlu1 %343 }
 0x118   : > { %v654_v27 = vpop.permute.xlu2 %653 }
 0x120   : > { %v348_v22 = vpop.permute.xlu0 %347  ;;  %v648_v28 = vpop.permute.xlu2 %647 }
 0x121   : > { %v356_v23 = vsel %vm353_vm8, %v346_v21, %v348_v22 }
 0x122   : > { %373 = vmatpush.bf16.msra.mxu0 %v356_v23 }
 0x128   : > { %v342_v25 = vpop.permute.xlu0 %341  ;;  %v340_v32 = vpop.permute.xlu2 %339 }
 0x129   : > { %v355_v26 = vsel %vm353_vm8, %v342_v25, %v344_v24 }
 0x12a   : > { %374 = vmatpush.bf16.msra.mxu0 %v355_v26 }
 0x130   : > { %v656_v37 = vpop.permute.xlu0 %655 }
 0x131   : > { %v385_v60 = vpop.permute.xlu2 %384 }
 0x138   : > { %v650_v41 = vpop.permute.xlu0 %649 }
 0x139   : > { %v660_v44 = vsel %vm353_vm8, %v648_v28, %v650_v41  ;;  %v402_v4 = vpop.permute.xlu2 %401 }
 0x140   : > { %v338_v33 = vpop.permute.xlu1 %337 }
 0x141   : > { %v354_v34 = vsel %vm353_vm8, %v338_v33, %v340_v32  ;;  %v751_v50 = vpop.permute.xlu2 %750 }
 0x142   : > { %375 = vmatpush.bf16.msra.mxu0 %v354_v34 }
 0x145   : > { %917 = vmatmul.msk.bf16.vlgmr.msra.gmra.mxu0 %vm361_vm9, %v976_v35 }
 0x148   : > { %v658_v38 = vpop.permute.xlu1 %657  ;;  %v644_v45 = vpop.permute.xlu0 %643 }
 0x149   : > { %v662_v39 = vsel %vm353_vm8, %v656_v37, %v658_v38  ;;  %v741_v51 = vpop.permute.xlu2 %740 }
 0x14a   : > { %v667_v40 = vsel %vm308_vm3, %v662_v39, 0 }
 0x14b   : > { %673 = vmatpush.bf16.msra.mxu2 %v667_v40 }
 0x150   : > { %v652_v42 = vpop.permute.xlu1 %651  ;;  %v390_v2 = vpop.permute.xlu0 %389 }
 0x151   : > { %v661_v43 = vsel %vm353_vm8, %v652_v42, %v654_v27  ;;  %v719_v52 = vpop.permute.xlu2 %718 }
 0x152   : > { %674 = vmatpush.bf16.msra.mxu2 %v661_v43 }
 0x156   : > { %675 = vmatpush.bf16.msra.mxu2 %v660_v44 }
 0x158   : > { %v646_v46 = vpop.permute.xlu1 %645  ;;  %v470_v54 = vpop.permute.xlu0 %469 }
 0x159   : > { %v659_v47 = vsel %vm353_vm8, %v644_v45, %v646_v46  ;;  %v714_v53 = vpop.permute.xlu2 %713 }
 0x15a   : > { %676 = vmatpush.bf16.msra.mxu2 %v659_v47 }
 0x15d   : > { %945 = vmatmul.msk.bf16.vlgmr.msra.gmra.mxu2 %vm361_vm9, %v976_v35 }
 0x160   : > { %v397_v62 = vpop.permute.xlu1 %396  ;;  %v460_v58 = vpop.permute.xlu0 %459 }
 0x168   : > { %v746_v55 = vpop.permute.xlu1 %745 }
 0x1c2   : > { %v377_v61 = vpop.f32.mrf.mxu0 }
 0x1c3   : > { %v392_v63 = vmul.f32 %v385_v60, %v377_v61  ;;  %v433_v61 = vpop.permute.xlu0 %432 }
 0x1c5   : > { %v404_v0 = vadd.f32 %v397_v62, %v392_v63 }
 0x1c7   : > { %v406_v1 = vmul.f32 0.5, %v404_v0 }
 0x1c9   : > { %1051 = vtanh.f32 %v406_v1 }
 0x1ca   : > { %v379_v3 = vpop.f32.mrf.mxu0 }
 0x1cb   : > { %v393_v5 = vmul.f32 %v390_v2, %v379_v3 }
 0x1cd   : > { %v405_v6 = vadd.f32 %v402_v4, %v393_v5 }
 0x1cf   : > { %v1052_v7 = vpop.eup %1051  ;;  %v407_v8 = vmul.f32 0.5, %v405_v6 }
 0x1d0   : > { %v410_v9 = vmul.f32 0.5, %v1052_v7 }
 0x1d1   : > { %1053 = vtanh.f32 %v407_v8 }
 0x1d2   : > { %v412_v10 = vadd.f32 0.5, %v410_v9 }
 0x1d4   : > { %v414_v11 = vpack.c.bf16 %v412_v10, %v412_v10 }
 0x1d6   : > { %416 = vst [vmem:[#allocation3 + $0x4] sm:$0xf] %v414_v11 }
 0x1d7   : > { %v1054_v12 = vpop.eup %1053 }
 0x1d8   : > { %v411_v13 = vmul.f32 0.5, %v1054_v12 }
 0x1da   : > { %v413_v14 = vadd.f32 0.5, %v411_v13 }
 0x1dc   : > { %v415_v15 = vpack.c.bf16 %v413_v14, %v413_v14 }
 0x1dd   : > { %v932_v19 = vld [vmem:[#allocation3 + $0x4] sm:$0xf] }
 0x1de   : > { %417 = vst [vmem:[#allocation3 + $0x10] sm:$0xf] %v415_v15  ;;  %v928_v20 = vld [vmem:[#allocation3 + $0x4] sm:$0xf] }
 0x1df   : > { %v978_v29 = vld [vmem:[#allocation3 + $0x4] sm:$0xf] }
 0x1e0   : > { %v678_v16 = vpop.f32.mrf.mxu2 }
 0x1e1   : > { %v683_v17 = vmul.f32 %v678_v16, %v385_v60  ;;  %v465_v60 = vpop.permute.xlu1 %464 }
 0x1e3   : > { %v685_v18 = vadd.f32 %v683_v17, %v397_v62  ;;  %v247_v17 = vld [vmem:[%s1470_s4] sm:$0xff] }
 0x1e5   : > { %v687_v21 = vmul.f32 0.5, %v685_v18  ;;  %v982_v22 = vld [vmem:[#allocation3 + $0xc] sm:$0xf0] }
 0x1e6   : > { %v980_v23 = vld [vmem:[#allocation3 + $0xc] sm:$0xf0]  ;;  %v933_v24 = vor.u32 %v982_v22, %v932_v19 }
 0x1e7   : > { %v929_v25 = vor.u32 %v980_v23, %v928_v20  ;;  %1055 = vtanh.f32 %v687_v21  ;;  %v922_v30 = vld [vmem:[#allocation3 + $0xc] sm:$0xf0]  ;;  %v248_v20 = vld [vmem:[%s1470_s4 + $0x8] sm:$0xff] }
 0x1e8   : > { %v680_v26 = vpop.f32.mrf.mxu2  ;;  %462 = vrot.lane.b32.xlu0 %v933_v24, %s1132_s10  ;;  %467 = vrot.lane.b32.xlu2 %v933_v24, %s1133_s11  ;;  %v1351_v34 = vor.u32 %v978_v29, %v922_v30 }
 0x1e9   : > { %v684_v27 = vmul.f32 %v680_v26, %v390_v2  ;;  %447 = vrot.lane.b32.xlu1 %v929_v25, %s1136_s14  ;;  %v438_v62 = vpop.permute.xlu1 %437 }
 0x1eb   : > { %v686_v28 = vadd.f32 %v684_v27, %v402_v4 }
 0x1ed   : > { %v1056_v31 = vpop.eup %1055  ;;  %v688_v32 = vmul.f32 0.5, %v686_v28 }
 0x1ee   : > { %v691_v33 = vmul.f32 0.5, %v1056_v31 }
 0x1ef   : > { %1057 = vtanh.f32 %v688_v32 }
 0x1f0   : > { %v693_v35 = vadd.f32 0.5, %v691_v33  ;;  %457 = vrot.lane.b32.xlu2 %v933_v24, %s1134_s12 }
 0x1f1   : > { %434 = vrot.lane.b32.xlu1 %v1351_v34, %s1137_s15 }
 0x1f2   : > { %v695_v36 = vpack.c.bf16 %v693_v35, %v693_v35 }
 0x1f4   : > { %697 = vst [vmem:[#allocation3 + $0x4] sm:$0xf] %v695_v36 }
 0x1f5   : > { %v1058_v37 = vpop.eup %1057 }
 0x1f6   : > { %v692_v38 = vmul.f32 0.5, %v1058_v37 }
 0x1f8   : > { %v694_v39 = vadd.f32 0.5, %v692_v38  ;;  %439 = vrot.lane.b32.xlu2 %v1351_v34, %s1135_s13 }
 0x1fa   : > { %v696_v40 = vpack.c.bf16 %v694_v39, %v694_v39 }
 0x1fb   : > { %v960_v41 = vld [vmem:[#allocation3 + $0x4] sm:$0xf] }
 0x1fc   : > { %698 = vst [vmem:[#allocation3 + $0x10] sm:$0xf] %v696_v40  ;;  %v983_v45 = vld [vmem:[#allocation3 + $0x4] sm:$0xf] }
 0x1fd   : > { %v956_v48 = vld [vmem:[#allocation3 + $0x4] sm:$0xf] }
 0x203   : > { %v987_v42 = vld [vmem:[#allocation3 + $0xc] sm:$0xf0] }
 0x204   : > { %v961_v43 = vor.u32 %v987_v42, %v960_v41  ;;  %v950_v44 = vld [vmem:[#allocation3 + $0xc] sm:$0xf0] }
 0x205   : > { %v953_v46 = vor.u32 %v983_v45, %v950_v44  ;;  %v985_v47 = vld [vmem:[#allocation3 + $0xc] sm:$0xf0] }
 0x206   : > { %743 = vrot.lane.b32.xlu0 %v961_v43, %s1132_s10  ;;  %748 = vrot.lane.b32.xlu1 %v961_v43, %s1133_s11  ;;  %v957_v49 = vor.u32 %v985_v47, %v956_v48  ;;  %s834_s10 = scalar_lea.hbm %s1471_s5, %s989_s8  ;;  %s835_s11 = sshll.u32 %s220_s7, 4  ;;  %s836_s11 = int_to_ptr.vmem [resolvable:$true] %s835_s11 }
 0x20e   : > { %738 = vrot.lane.b32.xlu1 %v961_v43, %s1134_s12  ;;  %720 = vrot.lane.b32.xlu0 %v953_v46, %s1135_s13  ;;  %s837_s12 = sshll.u32 %s834_s10, 4  ;;  %s838_s12 = int_to_ptr.hbm [resolvable:$true] %s837_s12 }
 0x20f   : > { %s1081_s13 = sshra.s32 %s838_s12, 4  ;;  %s1082_s13 = int_to_ptr.hbm [resolvable:$true] %s1081_s13 }
 0x210   : > { %p1088_p0 = scmp.lt.s32.totalorder %s1082_s13, %s1471_s5 }
 0x216   : > { %728 = vrot.lane.b32.xlu1 %v957_v49, %s1136_s14  ;;  %715 = vrot.lane.b32.xlu0 %v953_v46, %s1137_s15  ;;  %s1083_s14 = scalar_lea.hbm %s1082_s13, 32 }
 0x217   : > { %p1084_p11 = scmp.ne.s32.totalorder %s1082_s13, %s1083_s14  ;;  %p1089_p1 = scmp.lt.s32.totalorder %s1087_s25, %s1083_s14 }
 0x219   : > { %p1085_p12 = pnand %p1084_p11, %p1209_p5  ;;  %p1090_p2 = por %p1089_p1, %p1088_p0 }
 0x21b   : > { %p1086_p13 = pneg %p1085_p12 }
 0x21d   : > { %p1091_p3 = pnand %p1090_p2, %p1086_p13 }
 0x242   : > { %v468_v57 = vpop.permute.xlu2 %467 }
 0x243   : > { %499 = vrot.lane.b32.xlu0 %v468_v57, %s1138_s16  ;;  %v471_v6 = vsel %vm306_vm2, %v468_v57, %v470_v54  ;;  %v977_v54 = vld [vmem:[%s1469_s3] sm:$0xff] }
 0x24a   : > { %v458_v2 = vpop.permute.xlu2 %457 }
 0x24b   : > { %v461_v4 = vsel %vm294_vm4, %v458_v2, %v460_v58 }
 0x252   : > { %v440_v15 = vpop.permute.xlu2 %439 }
 0x253   : > { %v441_v16 = vsel %vm278_vm6, %v438_v62, %v440_v15 }
 0x25a   : > { %v463_v63 = vpop.permute.xlu0 %462 }
 0x25b   : > { %v448_v0 = vpop.permute.xlu1 %447  ;;  %495 = vrot.lane.b32.xlu1 %v463_v63, %s1138_s16  ;;  %v466_v1 = vsel %vm300_vm5, %v463_v63, %v465_v60 }
 0x25c   : > { %497 = vrot.lane.b32.xlu2 %v466_v1, %s1138_s16 }
 0x263   : > { %v435_v3 = vpop.permute.xlu1 %434  ;;  %491 = vrot.lane.b32.xlu1 %v458_v2, %s1138_s16 }
 0x264   : > { %493 = vrot.lane.b32.xlu2 %v461_v4, %s1138_s16  ;;  %v436_v5 = vsel %vm272_vm7, %v433_v61, %v435_v3 }
 0x26b   : > { %501 = vrot.lane.b32.xlu1 %v471_v6, %s1138_s16 }
 0x278   : > { %v749_v7 = vpop.permute.xlu1 %748  ;;  %v744_v8 = vpop.permute.xlu0 %743 }
 0x279   : > { %775 = vrot.lane.b32.xlu2 %v749_v7, %s1138_s16  ;;  %771 = vrot.lane.b32.xlu1 %v744_v8, %s1138_s16  ;;  %v747_v13 = vsel %vm300_vm5, %v744_v8, %v746_v55  ;;  %v752_v14 = vsel %vm306_vm2, %v749_v7, %v751_v50 }
 0x280   : > { %v739_v9 = vpop.permute.xlu1 %738  ;;  %v721_v10 = vpop.permute.xlu0 %720 }
 0x281   : > { %767 = vrot.lane.b32.xlu2 %v739_v9, %s1138_s16  ;;  %763 = vrot.lane.b32.xlu1 %v721_v10, %s1138_s16  ;;  %v742_v18 = vsel %vm294_vm4, %v739_v9, %v741_v51  ;;  %v722_v19 = vsel %vm278_vm6, %v719_v52, %v721_v10 }
 0x288   : > { %v729_v11 = vpop.permute.xlu1 %728  ;;  %v716_v12 = vpop.permute.xlu0 %715 }
 0x289   : > { %765 = vrot.lane.b32.xlu0 %v729_v11, %s1138_s16  ;;  %773 = vrot.lane.b32.xlu2 %v747_v13, %s1138_s16  ;;  %v717_v21 = vsel %vm272_vm7, %v714_v53, %v716_v12 }
 0x28a   : > { %759 = vrot.lane.b32.xlu1 %v716_v12, %s1138_s16 }
 0x291   : > { %777 = vrot.lane.b32.xlu0 %v752_v14, %s1138_s16  ;;  %489 = vrot.lane.b32.xlu2 %v448_v0, %s1138_s16 }
 0x292   : > { %753 = vrot.lane.b32.xlu1 %v1335_v56, %s1138_s16  ;;  %v911_v56 = vld [vmem:[%s1470_s4 + $0x18] sm:$0xff] }
 0x299   : > { %487 = vrot.lane.b32.xlu0 %v440_v15, %s1138_s16  ;;  %485 = vrot.lane.b32.xlu2 %v441_v16, %s1138_s16 }
 0x29a   : > { %483 = vrot.lane.b32.xlu1 %v435_v3, %s1138_s16 }
 0x2a1   : > { %769 = vrot.lane.b32.xlu0 %v742_v18, %s1138_s16  ;;  %755 = vrot.lane.b32.xlu2 %v953_v46, %s1138_s16 }
 0x2a2   : > { %536 = vperm.xlu1 %1050, %v247_v17  }
 0x2a9   : > { %477 = vrot.lane.b32.xlu2 %v1340_v59, %s1138_s16  ;;  %761 = vrot.lane.b32.xlu0 %v722_v19, %s1138_s16  ;;  %v910_v59 = vld [vmem:[%s1470_s4 + $0x10] sm:$0xff] }
 0x2aa   : > { %553 = vperm.xlu1 %1050, %v911_v56  }
 0x2b1   : > { %541 = vperm.xlu2 %1048, %v248_v20   ;;  %757 = vrot.lane.b32.xlu0 %v717_v21, %s1138_s16 }
 0x2b5   : > { %v500_v28 = vpop.permute.xlu0 %499 }
 0x2b6   : > { %v498_v22 = vpop.permute.xlu2 %497 }
 0x2b9   : > { %481 = vrot.lane.b32.xlu0 %v436_v5, %s1138_s16 }
 0x2be   : > { %v494_v23 = vpop.permute.xlu2 %493 }
 0x2c1   : > { %479 = vrot.lane.b32.xlu0 %v1351_v34, %s1138_s16 }
 0x2c9   : > { %548 = vperm.xlu0 %1049, %v910_v59  }
 0x2cd   : > { %v496_v24 = vpop.permute.xlu1 %495 }
 0x2ce   : > { %v507_v31 = vsel %vm353_vm8, %v496_v24, %v498_v22 }
 0x2d3   : > { %v776_v25 = vpop.permute.xlu2 %775 }
 0x2d5   : > { %v492_v26 = vpop.permute.xlu1 %491 }
 0x2d6   : > { %v506_v33 = vsel %vm353_vm8, %v492_v26, %v494_v23 }
 0x2db   : > { %v768_v27 = vpop.permute.xlu2 %767 }
 0x2dd   : > { %v502_v29 = vpop.permute.xlu1 %501 }
 0x2de   : > { %v508_v30 = vsel %vm353_vm8, %v500_v28, %v502_v29 }
 0x2df   : > { %521 = vmatpush.bf16.msra.mxu1 %v508_v30 }
 0x2e3   : > { %v774_v32 = vpop.permute.xlu2 %773  ;;  %522 = vmatpush.bf16.msra.mxu1 %v507_v31 }
 0x2e7   : > { %523 = vmatpush.bf16.msra.mxu1 %v506_v33 }
 0x2eb   : > { %v490_v34 = vpop.permute.xlu2 %489  ;;  %v772_v36 = vpop.permute.xlu1 %771 }
 0x2ec   : > { %524 = vmatpush.bf16.msra.mxu1 %v490_v34  ;;  %v783_v39 = vsel %vm353_vm8, %v772_v36, %v774_v32 }
 0x2f3   : > { %v486_v40 = vpop.permute.xlu2 %485  ;;  %v764_v43 = vpop.permute.xlu1 %763 }
 0x2fb   : > { %v766_v35 = vpop.permute.xlu0 %765  ;;  %v756_v52 = vpop.permute.xlu2 %755 }
 0x2fc   : > { %v760_v46 = vpop.permute.xlu1 %759 }
 0x303   : > { %v778_v37 = vpop.permute.xlu0 %777  ;;  %v478_v60 = vpop.permute.xlu2 %477 }
 0x304   : > { %v784_v38 = vsel %vm353_vm8, %v776_v25, %v778_v37  ;;  %v754_v49 = vpop.permute.xlu1 %753 }
 0x305   : > { %793 = vmatpush.bf16.msra.mxu3 %v784_v38  ;;  %v779_v53 = vsel %vm353_vm8, %v754_v49, %v756_v52 }
 0x309   : > { %794 = vmatpush.bf16.msra.mxu3 %v783_v39 }
 0x30b   : > { %v488_v41 = vpop.permute.xlu0 %487  ;;  %v542_v7 = vpop.permute.xlu2 %541 }
 0x30c   : > { %v505_v42 = vsel %vm353_vm8, %v486_v40, %v488_v41  ;;  %v484_v55 = vpop.permute.xlu1 %483 }
 0x30d   : > { %525 = vmatpush.bf16.msra.mxu1 %v505_v42 }
 0x313   : > { %v770_v44 = vpop.permute.xlu0 %769 }
 0x314   : > { %v782_v45 = vsel %vm353_vm8, %v768_v27, %v770_v44  ;;  %v537_v63 = vpop.permute.xlu1 %536 }
 0x315   : > { %795 = vmatpush.bf16.msra.mxu3 %v782_v45 }
 0x319   : > { %796 = vmatpush.bf16.msra.mxu3 %v766_v35 }
 0x31b   : > { %v762_v47 = vpop.permute.xlu0 %761 }
 0x31c   : > { %v781_v48 = vsel %vm353_vm8, %v762_v47, %v764_v43  ;;  %v554_v11 = vpop.permute.xlu1 %553 }
 0x31d   : > { %797 = vmatpush.bf16.msra.mxu3 %v781_v48 }
 0x323   : > { %v758_v50 = vpop.permute.xlu0 %757 }
 0x324   : > { %v780_v51 = vsel %vm353_vm8, %v758_v50, %v760_v46 }
 0x325   : > { %798 = vmatpush.bf16.msra.mxu3 %v780_v51 }
 0x329   : > { %799 = vmatpush.bf16.msra.mxu3 %v779_v53 }
 0x32b   : > { %v482_v57 = vpop.permute.xlu0 %481 }
 0x32c   : > { %966 = vmatmul.msk.bf16.vlgmr.msra.gmra.mxu3 %vm516_vm10, %v977_v54  ;;  %v504_v58 = vsel %vm353_vm8, %v482_v57, %v484_v55 }
 0x32d   : > { %526 = vmatpush.bf16.msra.mxu1 %v504_v58 }
 0x333   : > { %v480_v61 = vpop.permute.xlu0 %479 }
 0x334   : > { %v503_v62 = vsel %vm353_vm8, %v478_v60, %v480_v61 }
 0x335   : > { %527 = vmatpush.bf16.msra.mxu1 %v503_v62 }
 0x338   : > { %942 = vmatmul.msk.bf16.vlgmr.msra.gmra.mxu1 %vm516_vm10, %v977_v54 }
 0x33b   : > { %v549_v2 = vpop.permute.xlu0 %548 }
 0x3af   : > { %v801_v0 = vpop.f32.mrf.mxu3 }
 0x3b0   : > { %v806_v1 = vmul.f32 %v801_v0, %v537_v63 }
 0x3b2   : > { %v808_v3 = vadd.f32 %v806_v1, %v549_v2 }
 0x3b4   : > { %v810_v4 = vmul.f32 0.5, %v808_v3 }
 0x3b5   : > { %v529_v5 = vpop.f32.mrf.mxu1 }
 0x3b6   : > { %1059 = vtanh.f32 %v810_v4  ;;  %v544_v6 = vmul.f32 %v537_v63, %v529_v5 }
 0x3b7   : > { %v803_v8 = vpop.f32.mrf.mxu3 }
 0x3b8   : > { %v556_v9 = vadd.f32 %v549_v2, %v544_v6  ;;  %v807_v10 = vmul.f32 %v803_v8, %v542_v7 }
 0x3ba   : > { %v558_v12 = vmul.f32 0.5, %v556_v9  ;;  %v809_v13 = vadd.f32 %v807_v10, %v554_v11 }
 0x3bc   : > { %v1060_v14 = vpop.eup %1059  ;;  %1061 = vtanh.f32 %v558_v12  ;;  %v811_v15 = vmul.f32 0.5, %v809_v13 }
 0x3bd   : > { %v814_v16 = vmul.f32 0.5, %v1060_v14  ;;  %v531_v17 = vpop.f32.mrf.mxu1 }
 0x3be   : > { %1063 = vtanh.f32 %v811_v15  ;;  %v545_v18 = vmul.f32 %v542_v7, %v531_v17 }
 0x3bf   : > { %v816_v56 = vadd.f32 0.5, %v814_v16 }
 0x3c0   : > { %v557_v19 = vadd.f32 %v554_v11, %v545_v18 }
 0x3c1   : > { %967 = vst [vmem:[%s220_s7 + $0x10] sm:$0xff] %v816_v56 }
 0x3c2   : > { %v1062_v20 = vpop.eup %1061  ;;  %v559_v21 = vmul.f32 0.5, %v557_v19 }
 0x3c3   : > { %v562_v22 = vmul.f32 0.5, %v1062_v20 }
 0x3c4   : > { %v1064_v59 = vpop.eup %1063  ;;  %1065 = vtanh.f32 %v559_v21 }
 0x3c5   : > { %v564_v23 = vadd.f32 0.5, %v562_v22  ;;  %v815_v24 = vmul.f32 0.5, %v1064_v59 }
 0x3c7   : > { %566 = vst [vmem:[%s220_s7] sm:$0xff] %v564_v23  ;;  %v817_v25 = vadd.f32 0.5, %v815_v24 }
 0x3c9   : > { %968 = vst [vmem:[%s220_s7 + $0x18] sm:$0xff] %v817_v25 }
 0x3ca   : > { %v1066_v26 = vpop.eup %1065 }
 0x3cb   : > { %v563_v27 = vmul.f32 0.5, %v1066_v26 }
 0x3cd   : > { %v565_v28 = vadd.f32 0.5, %v563_v27 }
 0x3cf   : > { %567 = vst [vmem:[%s220_s7 + $0x8] sm:$0xff] %v565_v28 }
 0x3d0   : > { %1094 = shalt.err (!%p1091_p3)
}
 0x3d1   : > { %s1139_s30 = smov 128   ;;  %s1140_s6 = smov 8  }
 0x3d2   : > { %999 = dma.vmem_to_hbm [thread:$0]  (%p1209_p5), %s836_s11, 512, %s838_s12, %s822_s22, %s1139_s30, %s1139_s30, %s1140_s6  }
 0x3d3 PF: > { %p1005_p4 = scmp.ge.s32.totalorder %s1129_s21, 2  ;;  %s852_s7 = sand.u32 1, %s1117_s18  }
 0x3d4   : > { %s853_s8 = scalar_lea.sflag [#allocation5], %s852_s7 }
 0x3d5   : > { %p1002_p7 = pnand %p1005_p4, %p1213_p6 }
 0x3d7   : > { %p1003_p8 = pneg %p1002_p7 }
 0x3d9   : > { %1112 = dma.done.wait (%p1003_p8), %s853_s8, 512  }
 0x3da   : > { %1114 = vsyncadd (%p1003_p8), %s853_s8, 4294966784  ;;  %p15_p9 = scmp.ge.s32.totalorder %s1196_s24, 4   ;;  %s1474_s18 = smov %s1121_s19 }
 0x3db   : > { %s1475_s19 = smov %s1125_s20  ;;  %s1476_s20 = smov %s1207_s27 }
 0x3dc   : > { %s1477_s21 = smov %s1196_s24  ;;  %17 = sbr.rel (!%p15_p9) target bundleno = 3 (0x3), region = 81 }
 0x3e1   :  { %859 = vsyncpa [#allocation5], 1 }
 0x3e2   :  { %861 = vsyncpa [#allocation5 + $0x1], 1 }

</bundles_post_ra>
